<compile_context>
chip_gen: v7x
topology: tpu7x:2x2x1
jax: 0.10.0
libtpu: 0.0.40
codegen_flags: <defaults>
</compile_context>

<pallas_src>
import functools

import jax
import jax.numpy as jnp
from jax import lax
from jax.experimental import pallas as pl
from jax.experimental.pallas import tpu as pltpu

LANES = 128
SUBLANES = 8
MAX_BLOCK_ROWS = 4096  # 4096 x 128 x 4 B = 2 MiB per f32 input tile


def _round_up(x, m):
    return ((x + m - 1) // m) * m


def _masked_mse_kernel(x_ref, t_ref, sq_ref, cnt_ref, *,
                       block_rows, blocks_per_core, num_blocks,
                       total_blocks, tail_rows):
    """Streaming masked-MSE partial reduction.

    x_ref, t_ref : (block_rows, LANES) VMEM input tiles.
    sq_ref       : (SUBLANES, LANES) f32 per-core partial sum of squared errs.
    cnt_ref      : (SUBLANES, LANES) f32 per-core partial mask count.

    The output tiles are resident across the inner ("arbitrary") grid axis and
    double as the accumulators; the wrapper does the final cross-lane sum and
    divide.
    """
    c = pl.program_id(0)   # core band (parallel)
    i = pl.program_id(1)   # block within band (arbitrary / reduction)

    @pl.when(i == 0)
    def _init():
        sq_ref[...] = jnp.zeros_like(sq_ref)
        cnt_ref[...] = jnp.zeros_like(cnt_ref)

    gb = c * blocks_per_core + i   # global block index over the row axis

    def _accumulate(row_bound=None):
        x = x_ref[...].astype(jnp.float32)
        t = t_ref[...].astype(jnp.float32)
        valid = t >= 0.0
        if row_bound is not None:
            row = lax.broadcasted_iota(jnp.int32, t.shape, 0)
            valid = valid & (row < row_bound)
        # Keep the select form: the BlockSpec-padded region past the row bound
        # may hold arbitrary garbage (NaN/Inf); where() zeroes it *before* the
        # multiply so it cannot poison the sum.
        diff = jnp.where(valid, x - t, 0.0)
        cnt = jnp.where(valid, 1.0, 0.0)
        # In-register tree reduce of the tile down to one (8, 128) vreg:
        # pure VPU adds (no XLU), single small accumulator update per step.
        sq8 = jnp.sum((diff * diff).reshape(
            block_rows // SUBLANES, SUBLANES, LANES), axis=0)
        cnt8 = jnp.sum(cnt.reshape(
            block_rows // SUBLANES, SUBLANES, LANES), axis=0)
        # f32 count stays exact: each slot sees far fewer than 2**24 adds.
        sq_ref[...] += sq8
        cnt_ref[...] += cnt8

    full_last = (tail_rows == block_rows)   # static
    has_empty = (total_blocks > num_blocks)  # static
    last = num_blocks - 1

    if full_last and not has_empty:
        # Steady state: no row-bound masking anywhere on the hot path.
        _accumulate()
    else:
        @pl.when(gb < last)
        def _full_blocks():
            _accumulate()

        @pl.when(gb == last)
        def _last_block():
            if full_last:
                _accumulate()
            else:
                _accumulate(row_bound=tail_rows)
        # gb > last: empty band block (odd num_blocks on the 2-core split);
        # its clamped DMA is simply ignored.


@jax.jit
def custom_loss(inputs, targets):
    """Pallas implementation of CustomLoss.forward(inputs, targets)."""
    assert inputs.shape == targets.shape
    n = inputs.size

    x = inputs.reshape(-1)
    t = targets.reshape(-1)

    rows = n // LANES
    n_main = rows * LANES

    # Lane remainder (< 128 elements): folded in with a tiny JAX expression --
    # no full-tensor jnp.pad copies for unaligned sizes.
    if n_main < n:
        xr = x[n_main:].astype(jnp.float32)
        tr = t[n_main:].astype(jnp.float32)
        mr = tr >= 0.0
        rem_sq = jnp.sum(jnp.where(mr, (xr - tr) ** 2, 0.0))
        rem_cnt = jnp.sum(mr.astype(jnp.float32))
    else:
        rem_sq = jnp.float32(0.0)
        rem_cnt = jnp.float32(0.0)

    if rows == 0:
        # Tiny input: nothing for the kernel to do.
        return rem_sq / rem_cnt

    x2 = x[:n_main].reshape(rows, LANES)
    t2 = t[:n_main].reshape(rows, LANES)

    # Block rows: large (amortize per-step overhead), multiple of 16 (sublane
    # reshape + packed bf16 layouts), bounded by VMEM.
    block_rows = min(MAX_BLOCK_ROWS, _round_up(rows, 16))
    num_blocks = pl.cdiv(rows, block_rows)
    tail_rows = rows - (num_blocks - 1) * block_rows   # in (0, block_rows]

    # Split the streaming reduction across TensorCores (megacore on v7x);
    # on single-TC chips it is just a second serial band of blocks.
    ncores = 2 if num_blocks >= 2 else 1
    blocks_per_core = pl.cdiv(num_blocks, ncores)
    total_blocks = ncores * blocks_per_core

    kernel = functools.partial(
        _masked_mse_kernel,
        block_rows=block_rows,
        blocks_per_core=blocks_per_core,
        num_blocks=num_blocks,
        total_blocks=total_blocks,
        tail_rows=tail_rows,
    )

    def in_map(c, i):
        gb = c * blocks_per_core + i
        if total_blocks > num_blocks:
            # Clamp the (at most one) empty band block; kernel skips it.
            gb = jnp.minimum(gb, num_blocks - 1)
        return (gb, 0)

    out_map = lambda c, i: (c, 0)

    sq_out, cnt_out = pl.pallas_call(
        kernel,
        out_shape=(
            jax.ShapeDtypeStruct((ncores * SUBLANES, LANES), jnp.float32),
            jax.ShapeDtypeStruct((ncores * SUBLANES, LANES), jnp.float32),
        ),
        grid_spec=pltpu.PrefetchScalarGridSpec(
            num_scalar_prefetch=0,
            grid=(ncores, blocks_per_core),
            in_specs=[
                pl.BlockSpec((block_rows, LANES), in_map),
                pl.BlockSpec((block_rows, LANES), in_map),
            ],
            out_specs=(
                pl.BlockSpec((SUBLANES, LANES), out_map),
                pl.BlockSpec((SUBLANES, LANES), out_map),
            ),
        ),
        compiler_params=pltpu.CompilerParams(
            dimension_semantics=("parallel", "arbitrary"),
            vmem_limit_bytes=48 * 1024 * 1024,
        ),
    )(x2, t2)

    sq_total = jnp.sum(sq_out) + rem_sq
    cnt_total = jnp.sum(cnt_out) + rem_cnt
    # NaN when no target >= 0 (matches torch mean over an empty selection).
    return sq_total / cnt_total


def _reference(inputs, targets):
    mask = targets >= 0
    return jnp.sum(jnp.where(mask, (inputs - targets) ** 2, 0.0)) / jnp.sum(
        mask.astype(jnp.float32)
    )


def _check(shape, key):
    k_in, k_tg = jax.random.split(key)
    inputs = jax.random.normal(k_in, shape, dtype=jnp.float32)
    targets = jax.random.uniform(k_tg, shape, dtype=jnp.float32,
                                 minval=-1.0, maxval=1.0)
    loss = custom_loss(inputs, targets)
    jax.block_until_ready(loss)
    ref = _reference(inputs, targets)
    assert jnp.allclose(loss, ref, rtol=1e-4, atol=1e-6), (shape, loss, ref)
    return loss


if __name__ == "__main__":
    key = jax.random.PRNGKey(0)
    k0, k1, k2 = jax.random.split(key, 3)

    # Primary small NCHW example consistent with a segmentation-style output.
    _check((2, 4, 16, 16), k0)

    # Extra robustness checks:
    #  - n not divisible by 128 (lane-remainder wrapper path) and a single
    #    partial block (static tail mask path).
    _check((3, 5, 17, 13), k1)
    #  - multiple blocks, 2-core split, partial tail AND one empty band block.
    _check((2, 4, 488, 400), k2)

    print("KERNEL_OK")
</pallas_src>

<mosaic_0001>
module attributes {stable_mosaic.version = 11 : i64} {
  func.func @_masked_mse_kernel(%arg0: i32, %arg1: i32, %arg2: memref<16x128xf32, #tpu.memory_space<vmem>>, %arg3: memref<16x128xf32, #tpu.memory_space<vmem>>, %arg4: memref<8x128xf32, #tpu.memory_space<vmem>>, %arg5: memref<8x128xf32, #tpu.memory_space<vmem>>) attributes {dimension_semantics = [#tpu.dimension_semantics<parallel>, #tpu.dimension_semantics<arbitrary>], iteration_bounds = array<i64: 1, 1>, scalar_prefetch = 0 : i64, scratch_operands = 0 : i64, tpu.core_type = #tpu.core_type<tc>, window_params = [{transform_indices = @transform_0, window_bounds = array<i64: 16, 128>}, {transform_indices = @transform_1, window_bounds = array<i64: 16, 128>}, {transform_indices = @transform_2, window_bounds = array<i64: 8, 128>}, {transform_indices = @transform_3, window_bounds = array<i64: 8, 128>}]} {
    %c0_i32 = arith.constant 0 : i32
    %0 = arith.cmpi eq, %arg1, %c0_i32 : i32
    %1 = arith.extui %0 : i1 to i32
    %c0_i32_0 = arith.constant 0 : i32
    %2 = arith.cmpi ne, %1, %c0_i32_0 : i32
    scf.if %2 {
      %cst_17 = arith.constant 0.000000e+00 : f32
      %24 = vector.broadcast %cst_17 : f32 to vector<8x128xf32>
      %c0_18 = arith.constant 0 : index
      %c0_19 = arith.constant 0 : index
      %25 = vector.load %arg4[%c0_18, %c0_19] : memref<8x128xf32, #tpu.memory_space<vmem>>, vector<8x128xf32>
      tpu.vector_store %arg4[%c0_18, %c0_19], %24 {strides = array<i32>} : memref<8x128xf32, #tpu.memory_space<vmem>>, vector<8x128xf32>,
      %cst_20 = arith.constant 0.000000e+00 : f32
      %26 = vector.broadcast %cst_20 : f32 to vector<8x128xf32>
      %c0_21 = arith.constant 0 : index
      %c0_22 = arith.constant 0 : index
      %27 = vector.load %arg5[%c0_21, %c0_22] : memref<8x128xf32, #tpu.memory_space<vmem>>, vector<8x128xf32>
      tpu.vector_store %arg5[%c0_21, %c0_22], %26 {strides = array<i32>} : memref<8x128xf32, #tpu.memory_space<vmem>>, vector<8x128xf32>,
    } else {
    }
    %c0 = arith.constant 0 : index
    %c0_1 = arith.constant 0 : index
    %3 = vector.load %arg2[%c0, %c0_1] : memref<16x128xf32, #tpu.memory_space<vmem>>, vector<16x128xf32>
    %c0_2 = arith.constant 0 : index
    %c0_3 = arith.constant 0 : index
    %4 = vector.load %arg3[%c0_2, %c0_3] : memref<16x128xf32, #tpu.memory_space<vmem>>, vector<16x128xf32>
    %cst = arith.constant 0.000000e+00 : f32
    %5 = vector.broadcast %cst : f32 to vector<16x128xf32>
    %6 = arith.cmpf oge, %4, %5 : vector<16x128xf32>
    %7 = arith.subf %3, %4 : vector<16x128xf32>
    %cst_4 = arith.constant 0.000000e+00 : f32
    %8 = vector.broadcast %cst_4 : f32 to vector<16x128xf32>
    %9 = arith.select %6, %7, %8 : vector<16x128xi1>, vector<16x128xf32>
    %cst_5 = arith.constant 1.000000e+00 : f32
    %cst_6 = arith.constant 0.000000e+00 : f32
    %10 = vector.broadcast %cst_5 : f32 to vector<16x128xf32>
    %11 = vector.broadcast %cst_6 : f32 to vector<16x128xf32>
    %12 = arith.select %6, %10, %11 : vector<16x128xi1>, vector<16x128xf32>
    %13 = arith.mulf %9, %9 : vector<16x128xf32>
    %14 = vector.shape_cast %13 : vector<16x128xf32> to vector<2x8x128xf32>
    %cst_7 = arith.constant dense<0.000000e+00> : vector<8x128xf32>
    %15 = vector.multi_reduction <add>, %14, %cst_7 [0] : vector<2x8x128xf32> to vector<8x128xf32>
    %16 = vector.shape_cast %12 : vector<16x128xf32> to vector<2x8x128xf32>
    %cst_8 = arith.constant dense<0.000000e+00> : vector<8x128xf32>
    %17 = vector.multi_reduction <add>, %16, %cst_8 [0] : vector<2x8x128xf32> to vector<8x128xf32>
    %c0_9 = arith.constant 0 : index
    %c0_10 = arith.constant 0 : index
    %18 = vector.load %arg4[%c0_9, %c0_10] : memref<8x128xf32, #tpu.memory_space<vmem>>, vector<8x128xf32>
    %19 = arith.addf %18, %15 : vector<8x128xf32>
    %c0_11 = arith.constant 0 : index
    %c0_12 = arith.constant 0 : index
    %20 = vector.load %arg4[%c0_11, %c0_12] : memref<8x128xf32, #tpu.memory_space<vmem>>, vector<8x128xf32>
    tpu.vector_store %arg4[%c0_11, %c0_12], %19 {strides = array<i32>} : memref<8x128xf32, #tpu.memory_space<vmem>>, vector<8x128xf32>,
    %c0_13 = arith.constant 0 : index
    %c0_14 = arith.constant 0 : index
    %21 = vector.load %arg5[%c0_13, %c0_14] : memref<8x128xf32, #tpu.memory_space<vmem>>, vector<8x128xf32>
    %22 = arith.addf %21, %17 : vector<8x128xf32>
    %c0_15 = arith.constant 0 : index
    %c0_16 = arith.constant 0 : index
    %23 = vector.load %arg5[%c0_15, %c0_16] : memref<8x128xf32, #tpu.memory_space<vmem>>, vector<8x128xf32>
    tpu.vector_store %arg5[%c0_15, %c0_16], %22 {strides = array<i32>} : memref<8x128xf32, #tpu.memory_space<vmem>>, vector<8x128xf32>,
    return
  }
  func.func @transform_0(%arg0: i32, %arg1: i32) -> (i32, i32) {
    %c1_i32 = arith.constant 1 : i32
    %0 = arith.muli %arg0, %c1_i32 : i32
    %1 = arith.addi %0, %arg1 : i32
    %c0_i32 = arith.constant 0 : i32
    %c0_i32_0 = arith.constant 0 : i32
    return %1, %c0_i32 : i32, i32
  }
  func.func @transform_1(%arg0: i32, %arg1: i32) -> (i32, i32) {
    %c1_i32 = arith.constant 1 : i32
    %0 = arith.muli %arg0, %c1_i32 : i32
    %1 = arith.addi %0, %arg1 : i32
    %c0_i32 = arith.constant 0 : i32
    %c0_i32_0 = arith.constant 0 : i32
    return %1, %c0_i32 : i32, i32
  }
  func.func @transform_2(%arg0: i32, %arg1: i32) -> (i32, i32) {
    %c0_i32 = arith.constant 0 : i32
    %c0_i32_0 = arith.constant 0 : i32
    return %arg0, %c0_i32 : i32, i32
  }
  func.func @transform_3(%arg0: i32, %arg1: i32) -> (i32, i32) {
    %c0_i32 = arith.constant 0 : i32
    %c0_i32_0 = arith.constant 0 : i32
    return %arg0, %c0_i32 : i32, i32
  }
}

</mosaic_0001>

<bundles_post_ra>
// kernel: custom_loss.1
= control target key start
LH: loop header
LB: loop body
LE: loop exit
PB: predicated region body
PF: predicated region fallthrough
CT: control target
= control target key end

     0   :  { %v106_v6 = vmov 0.0   ;;  %s145_s0 = inlined_call_operand.vmem [shape: f32[16,128], index: 0, kind: input, shape index: {}]   ;;  %s146_s1 = inlined_call_operand.vmem [shape: f32[16,128], index: 1, kind: input, shape index: {}]   ;;  %s147_s3 = inlined_call_operand.vmem [shape: f32[8,128], index: 3, kind: output, shape index: {1}]   ;;  %s148_s2 = inlined_call_operand.vmem [shape: f32[8,128], index: 2, kind: output, shape index: {0}]  }
   0x1   :  { %v63_v0 = vld [vmem:[%s145_s0] sm:$0xff]  ;;  %v64_v1 = vld [vmem:[%s145_s0 + $0x8] sm:$0xff] }
   0x2   :  { %v65_v2 = vld [vmem:[%s146_s1] sm:$0xff]  ;;  %v66_v3 = vld [vmem:[%s146_s1 + $0x8] sm:$0xff] }
   0x3   :  { %vm67_vm0 = vcmp.ge.f32.partialorder %v65_v2, 0.0  ;;  %v69_v4 = vsub.f32 %v63_v0, %v65_v2  ;;  %vm68_vm1 = vcmp.ge.f32.partialorder %v66_v3, 0.0  ;;  %v70_v5 = vsub.f32 %v64_v1, %v66_v3 }
   0x4   :  { %v73_v7 = vsel %vm67_vm0, 1.0, %v106_v6  ;;  %v74_v9 = vsel %vm68_vm1, 1.0, %v106_v6 }
   0x5   :  { %v71_v8 = vsel %vm67_vm0, %v69_v4, 0.0  ;;  %v72_v10 = vsel %vm68_vm1, %v70_v5, 0.0  ;;  %v78_v12 = vadd.f32 %v74_v9, %v73_v7 }
   0x6   :  { %v75_v11 = vmul.f32 %v71_v8, %v71_v8  ;;  %v76_v13 = vmul.f32 %v72_v10, %v72_v10 }
   0x7   :  { %84 = vst [vmem:[%s147_s3] sm:$0xff] %v78_v12 }
   0x8   :  { %v77_v14 = vadd.f32 %v76_v13, %v75_v11 }
   0xa   :  { %81 = vst [vmem:[%s148_s2] sm:$0xff] %v77_v14 }

</bundles_post_ra>
